<compile_context>
chip_gen: v7x
topology: tpu7x:2x2x1
jax: 0.10.0
libtpu: 0.0.40
codegen_flags: <defaults>
</compile_context>

<pallas_src>
import functools

import jax
import jax.numpy as jnp
from jax.experimental import pallas as pl
from jax.experimental.pallas import tpu as pltpu

LANE = 128
DEFAULT_VMEM_LIMIT = 32 * 1024 * 1024  # safe scoped-VMEM budget everywhere


def _round_up(x, m):
    return ((x + m - 1) // m) * m


def _pad2d(a, rows, cols):
    r, c = a.shape
    if (r, c) == (rows, cols):
        return a
    return jnp.zeros((rows, cols), a.dtype).at[:r, :c].set(a)


def _tpu_vmem_bytes():
    """Physical VMEM per TensorCore; conservative 64 MiB (v7x) fallback."""
    try:
        info = pltpu.get_tpu_info()
        cap = getattr(info, "vmem_capacity_bytes", None)
        if cap:
            return int(cap)
    except Exception:
        pass
    return 64 * 1024 * 1024


def _pick_tm(n):
    # Prefer larger row tiles (less hs re-read / grid overhead) but keep at
    # least 8 row tiles so the v7x megacore 'parallel' axis stays balanced.
    for tm in (512, 256):
        if n >= 8 * tm:
            return tm
    return 128


def _pick_tk(n_pad, cap=2048):
    tk = min(cap, n_pad)
    while n_pad % tk:
        tk -= LANE
    return tk


# ----------------------------------------------------------------------------
# In-kernel MaxK nonlinearity: keep the top-k values of each row, zero rest.
# Runs the k-1 "remove current max" passes in bf16 (hs is stored bf16 anyway)
# to halve the serial XLU/VPU chain.  NOTE: with duplicate values the tie
# handling differs slightly from torch.topk (all ties >= threshold survive).
# TODO(synk): for k >> 8 replace with a threshold binary search to avoid
# making the XLU the saturating slot.
# ----------------------------------------------------------------------------
def _maxk_rows_bf16(y_f32, k):
    feat = y_f32.shape[-1]
    yb = y_f32.astype(jnp.bfloat16)
    if k >= feat:
        return yb
    work = yb
    for _ in range(k - 1):
        cur_max = jnp.max(work, axis=-1, keepdims=True)
        work = jnp.where(work >= cur_max, -jnp.inf, work)
    thresh = jnp.max(work, axis=-1, keepdims=True)  # ~k-th largest per row
    return jnp.where(yb >= thresh, yb, jnp.zeros_like(yb))


# ----------------------------------------------------------------------------
# Kernel 1: fused linear (+ bias) with optional relu.
#   y[tile] = act(x[tile] @ W + b)
# ----------------------------------------------------------------------------
def _linear_kernel(x_ref, w_ref, b_ref, o_ref, *, act):
    y = jnp.dot(x_ref[...], w_ref[...], preferred_element_type=jnp.float32)
    y = y + b_ref[...].astype(jnp.float32)
    if act == "relu":
        y = jnp.maximum(y, 0.0)
    o_ref[...] = y.astype(o_ref.dtype)


def pallas_linear(x, w, b, *, act="none", tm=128, out_dtype=jnp.bfloat16):
    n, f_in = x.shape
    f_out = w.shape[1]
    assert n % tm == 0 and f_in % LANE == 0 and f_out % LANE == 0
    cost = pl.CostEstimate(
        flops=int(2 * n * f_in * f_out),
        transcendentals=0,
        bytes_accessed=int(
            n * f_in * x.dtype.itemsize
            + f_in * f_out * w.dtype.itemsize
            + n * f_out * jnp.dtype(out_dtype).itemsize
        ),
    )
    return pl.pallas_call(
        functools.partial(_linear_kernel, act=act),
        out_shape=jax.ShapeDtypeStruct((n, f_out), out_dtype),
        grid_spec=pltpu.PrefetchScalarGridSpec(
            num_scalar_prefetch=0,
            grid=(n // tm,),
            in_specs=[
                pl.BlockSpec((tm, f_in), lambda i: (i, 0)),
                pl.BlockSpec((f_in, f_out), lambda i: (0, 0)),
                pl.BlockSpec((1, f_out), lambda i: (0, 0)),
            ],
            out_specs=pl.BlockSpec((tm, f_out), lambda i: (i, 0)),
        ),
        compiler_params=pltpu.CompilerParams(
            dimension_semantics=("parallel",),
            vmem_limit_bytes=DEFAULT_VMEM_LIMIT,
        ),
        cost_estimate=cost,
    )(x, w, b)


# ----------------------------------------------------------------------------
# Kernel 2: fused per-layer Linear + MaxK.  Produces BOTH the dense output h
# (needed for the GIN self term) and its top-k sparsified copy hs (used for
# the neighbor aggregation), avoiding an extra HBM round trip.
# ----------------------------------------------------------------------------
def _linear_maxk_kernel(x_ref, w_ref, b_ref, h_ref, hs_ref, *, k):
    y = jnp.dot(x_ref[...], w_ref[...], preferred_element_type=jnp.float32)
    y = y + b_ref[...].astype(jnp.float32)
    h_ref[...] = y.astype(h_ref.dtype)
    hs_ref[...] = _maxk_rows_bf16(y, k).astype(hs_ref.dtype)


def pallas_linear_maxk(x, w, b, *, k, tm=128, out_dtype=jnp.bfloat16):
    n, f_in = x.shape
    f_out = w.shape[1]
    assert n % tm == 0 and f_in % LANE == 0 and f_out % LANE == 0
    cost = pl.CostEstimate(
        flops=int(2 * n * f_in * f_out),
        transcendentals=0,
        bytes_accessed=int(
            n * f_in * x.dtype.itemsize
            + f_in * f_out * w.dtype.itemsize
            + 2 * n * f_out * jnp.dtype(out_dtype).itemsize
        ),
    )
    return pl.pallas_call(
        functools.partial(_linear_maxk_kernel, k=k),
        out_shape=(
            jax.ShapeDtypeStruct((n, f_out), out_dtype),
            jax.ShapeDtypeStruct((n, f_out), out_dtype),
        ),
        grid_spec=pltpu.PrefetchScalarGridSpec(
            num_scalar_prefetch=0,
            grid=(n // tm,),
            in_specs=[
                pl.BlockSpec((tm, f_in), lambda i: (i, 0)),
                pl.BlockSpec((f_in, f_out), lambda i: (0, 0)),
                pl.BlockSpec((1, f_out), lambda i: (0, 0)),
            ],
            out_specs=[
                pl.BlockSpec((tm, f_out), lambda i: (i, 0)),
                pl.BlockSpec((tm, f_out), lambda i: (i, 0)),
            ],
        ),
        compiler_params=pltpu.CompilerParams(
            dimension_semantics=("parallel",),
            vmem_limit_bytes=DEFAULT_VMEM_LIMIT,
        ),
        cost_estimate=cost,
    )(x, w, b)


# ----------------------------------------------------------------------------
# Kernel 3: fused GIN layer: K-tiled aggregation + eps-self term + 2-layer MLP
#   acc(i)   = sum_k A[i, k] @ hs[k]            (f32 VMEM accumulator)
#   z        = (1 + eps) * h[i] + acc(i)
#   out[i]   = relu(z @ W1 + b1) @ W2 + b2
# A is int8 0/1 in HBM and upcast to bf16 just before the dot.
# When hs_resident, hs is one constant-index VMEM block sliced with pl.ds.
# Grid = (rows, contraction); contraction axis is last and "arbitrary".
# ----------------------------------------------------------------------------
def _gin_layer_kernel(a_ref, hs_ref, h_ref, eps_ref, w1_ref, b1_ref,
                      w2_ref, b2_ref, o_ref, acc_ref, *, tk, hs_resident):
    kk = pl.program_id(1)

    @pl.when(kk == 0)
    def _():
        acc_ref[...] = jnp.zeros_like(acc_ref)

    # int8 (0/1) adjacency -> bf16 on the VPU (rides idle VALU slots).
    a = a_ref[...].astype(jnp.float32).astype(jnp.bfloat16)
    if hs_resident:
        start = pl.multiple_of(kk * tk, tk)
        hs = hs_ref[pl.ds(start, tk), :]
    else:
        hs = hs_ref[...]
    acc_ref[...] += jnp.dot(a, hs, preferred_element_type=jnp.float32)

    @pl.when(kk == pl.num_programs(1) - 1)
    def _():
        eps = eps_ref[...].astype(jnp.float32)          # (1, hid), broadcast
        z = (1.0 + eps) * h_ref[...].astype(jnp.float32) + acc_ref[...]
        z1 = jnp.dot(z.astype(w1_ref.dtype), w1_ref[...],
                     preferred_element_type=jnp.float32)
        z1 = jnp.maximum(z1 + b1_ref[...].astype(jnp.float32), 0.0)
        z2 = jnp.dot(z1.astype(w2_ref.dtype), w2_ref[...],
                     preferred_element_type=jnp.float32)
        z2 = z2 + b2_ref[...].astype(jnp.float32)
        o_ref[...] = z2.astype(o_ref.dtype)


def pallas_gin_layer(adj_i8, hs, h, eps, w1, b1, w2, b2, *, tm, tk,
                     hs_resident, vmem_limit, out_dtype=jnp.bfloat16):
    n = adj_i8.shape[0]
    hid = h.shape[1]
    assert n % tm == 0 and n % tk == 0 and hid % LANE == 0
    hs_reads = 1 if hs_resident else (n // tm)
    cost = pl.CostEstimate(
        flops=int(2 * n * n * hid + 4 * n * hid * hid),
        transcendentals=0,
        bytes_accessed=int(
            n * n * adj_i8.dtype.itemsize
            + hs_reads * n * hid * hs.dtype.itemsize
            + n * hid * h.dtype.itemsize
            + 2 * hid * hid * w1.dtype.itemsize
            + n * hid * jnp.dtype(out_dtype).itemsize
        ),
    )
    if hs_resident:
        hs_spec = pl.BlockSpec((n, hid), lambda i, kk: (0, 0))   # VMEM-resident
    else:
        hs_spec = pl.BlockSpec((tk, hid), lambda i, kk: (kk, 0))
    return pl.pallas_call(
        functools.partial(_gin_layer_kernel, tk=tk, hs_resident=hs_resident),
        out_shape=jax.ShapeDtypeStruct((n, hid), out_dtype),
        grid_spec=pltpu.PrefetchScalarGridSpec(
            num_scalar_prefetch=0,
            grid=(n // tm, n // tk),
            in_specs=[
                pl.BlockSpec((tm, tk), lambda i, kk: (i, kk)),     # A (int8)
                hs_spec,                                            # maxk(h)
                pl.BlockSpec((tm, hid), lambda i, kk: (i, 0)),      # h (self)
                pl.BlockSpec((1, hid), lambda i, kk: (0, 0)),       # eps
                pl.BlockSpec((hid, hid), lambda i, kk: (0, 0)),     # W_mlp1
                pl.BlockSpec((1, hid), lambda i, kk: (0, 0)),       # b_mlp1
                pl.BlockSpec((hid, hid), lambda i, kk: (0, 0)),     # W_mlp2
                pl.BlockSpec((1, hid), lambda i, kk: (0, 0)),       # b_mlp2
            ],
            out_specs=pl.BlockSpec((tm, hid), lambda i, kk: (i, 0)),
            scratch_shapes=[pltpu.VMEM((tm, hid), jnp.float32)],
        ),
        compiler_params=pltpu.CompilerParams(
            dimension_semantics=("parallel", "arbitrary"),
            vmem_limit_bytes=vmem_limit,
        ),
        cost_estimate=cost,
    )(adj_i8, hs, h, eps, w1, b1, w2, b2)


# ----------------------------------------------------------------------------
# Parameter init (deterministic; xavier_uniform for weights as in
# reset_parameters(); nn.Linear-style uniform for biases; eps = 0).
# Weights stored [in, out] (transpose of PyTorch layout), bf16; biases f32.
# ----------------------------------------------------------------------------
def _xavier(key, fan_in, fan_out, dtype=jnp.bfloat16):
    bound = (6.0 / (fan_in + fan_out)) ** 0.5
    w = jax.random.uniform(key, (fan_in, fan_out), jnp.float32, -bound, bound)
    return w.astype(dtype)


def _bias(key, fan_in, fan_out):
    bound = 1.0 / (fan_in ** 0.5)
    return jax.random.uniform(key, (1, fan_out), jnp.float32, -bound, bound)


def init_params(key, in_size, hid_size, out_size, num_layers):
    keys = jax.random.split(key, 4 + 6 * num_layers)
    it = iter(keys)
    p = {
        "w_in": _xavier(next(it), in_size, hid_size),
        "b_in": _bias(next(it), in_size, hid_size),
        "w_out": _xavier(next(it), hid_size, out_size),
        "b_out": _bias(next(it), hid_size, out_size),
        "w_lin": [], "b_lin": [],
        "eps": [],
        "w_mlp1": [], "b_mlp1": [],
        "w_mlp2": [], "b_mlp2": [],
    }
    for _ in range(num_layers):
        p["w_lin"].append(_xavier(next(it), hid_size, hid_size))
        p["b_lin"].append(_bias(next(it), hid_size, hid_size))
        p["eps"].append(jnp.zeros((1, 1), jnp.float32))   # learn_eps init 0
        p["w_mlp1"].append(_xavier(next(it), hid_size, hid_size))
        p["b_mlp1"].append(_bias(next(it), hid_size, hid_size))
        p["w_mlp2"].append(_xavier(next(it), hid_size, hid_size))
        p["b_mlp2"].append(_bias(next(it), hid_size, hid_size))
    return p


# ----------------------------------------------------------------------------
# Full forward pass (eval mode).  Pads rows to tm and feature dims to 128,
# runs the kernels, slices the result back to (N, out_size).
# ----------------------------------------------------------------------------
def maxk_gin_forward(adj, x, params, *, num_layers, maxk, tm=None):
    n, in_size = x.shape
    hid = params["w_lin"][0].shape[0] if num_layers else params["w_in"].shape[1]
    out_size = params["w_out"].shape[1]
    assert hid % LANE == 0, "hid_size must be a multiple of 128 (lane width)"

    if tm is None:
        tm = _pick_tm(n)
    n_pad = _round_up(n, tm)
    in_pad = _round_up(in_size, LANE)
    out_pad = _round_up(out_size, LANE)

    xp = _pad2d(x.astype(jnp.bfloat16), n_pad, in_pad)
    # int8 0/1 adjacency in HBM (half the bytes of bf16); upcast in-kernel.
    ap = _pad2d(jnp.rint(adj).astype(jnp.int8), n_pad, n_pad)

    w_in = _pad2d(params["w_in"], in_pad, hid)
    w_out = _pad2d(params["w_out"], hid, out_pad)
    b_out = _pad2d(params["b_out"], 1, out_pad)

    # x = relu(lin_in(x))
    h = pallas_linear(xp, w_in, params["b_in"], act="relu", tm=tm)

    tk = _pick_tk(n_pad)
    vmem_cap = _tpu_vmem_bytes()
    hs_bytes = n_pad * hid * 2  # bf16
    # Resident hs (double-buffered by the pipeline) must leave room for the
    # A pipeline buffers + accumulator; cap/4 keeps v7x's 64 MiB VMEM safe
    # while allowing ~32 MiB on v5e/v6e (128 MiB VMEM).
    hs_resident = hs_bytes <= vmem_cap // 4
    gin_vmem_limit = (max(DEFAULT_VMEM_LIMIT, (vmem_cap * 3) // 4)
                      if hs_resident else DEFAULT_VMEM_LIMIT)

    for i in range(num_layers):
        # linlayers[i]; ('maxk' branch of the GNN forward is a pass-through —
        # the MaxK nonlinearity lives inside MaxKGINConv and is fused here).
        h_dense, h_sparse = pallas_linear_maxk(
            h, params["w_lin"][i], params["b_lin"][i], k=maxk, tm=tm)
        # dropout(p=0.5) is identity in eval mode.
        eps_b = jnp.broadcast_to(params["eps"][i], (1, hid)).astype(jnp.float32)
        h = pallas_gin_layer(
            ap, h_sparse, h_dense, eps_b,
            params["w_mlp1"][i], params["b_mlp1"][i],
            params["w_mlp2"][i], params["b_mlp2"][i],
            tm=tm, tk=tk, hs_resident=hs_resident,
            vmem_limit=gin_vmem_limit)
        # norm=False -> no LayerNorm.

    out = pallas_linear(h, w_out, b_out, act="none", tm=tm,
                        out_dtype=jnp.float32)
    return out[:n, :out_size]


# ----------------------------------------------------------------------------
# Graph construction glue (plain JAX): dense 0/1 symmetric adjacency,
# no self-loops (GIN handles self via the (1+eps) term).
# ----------------------------------------------------------------------------
def build_adjacency(key, n, p=0.1):
    a = (jax.random.uniform(key, (n, n)) < p).astype(jnp.float32)
    a = jnp.maximum(a, a.T)
    a = a * (1.0 - jnp.eye(n, dtype=jnp.float32))
    return a


if __name__ == "__main__":
    # Small shapes consistent with the module; hid padded to lane width 128.
    N = 200              # graph nodes (not a multiple of 128 -> exercises padding)
    IN_SIZE = 48
    HID_SIZE = 128
    OUT_SIZE = 10
    NUM_HID_LAYERS = 2
    MAXK = 8

    root = jax.random.PRNGKey(0)
    k_x, k_g, k_p = jax.random.split(root, 3)

    x = jax.random.normal(k_x, (N, IN_SIZE), dtype=jnp.float32)
    adj = build_adjacency(k_g, N)
    params = init_params(k_p, IN_SIZE, HID_SIZE, OUT_SIZE, NUM_HID_LAYERS)

    out = maxk_gin_forward(adj, x, params,
                           num_layers=NUM_HID_LAYERS, maxk=MAXK)
    out = jax.block_until_ready(out)
    assert out.shape == (N, OUT_SIZE)
    assert bool(jnp.all(jnp.isfinite(out)))
    print("KERNEL_OK")
</pallas_src>

<mosaic_0001>
module attributes {stable_mosaic.version = 11 : i64} {
  func.func @_linear_kernel(%arg0: i32, %arg1: memref<128x128xbf16, #tpu.memory_space<vmem>>, %arg2: memref<128x128xbf16, #tpu.memory_space<vmem>>, %arg3: memref<1x128xf32, #tpu.memory_space<vmem>>, %arg4: memref<128x128xbf16, #tpu.memory_space<vmem>>) attributes {dimension_semantics = [#tpu.dimension_semantics<parallel>], iteration_bounds = array<i64: 2>, scalar_prefetch = 0 : i64, scratch_operands = 0 : i64, tpu.core_type = #tpu.core_type<tc>, window_params = [{transform_indices = @transform_0, window_bounds = array<i64: 128, 128>}, {pipeline_mode = #tpu.pipeline_mode<synchronous>, transform_indices = @transform_1, window_bounds = array<i64: 128, 128>}, {pipeline_mode = #tpu.pipeline_mode<synchronous>, transform_indices = @transform_2, window_bounds = array<i64: 1, 128>}, {transform_indices = @transform_3, window_bounds = array<i64: 128, 128>}]} {
    %c0 = arith.constant 0 : index
    %c0_0 = arith.constant 0 : index
    %0 = vector.load %arg1[%c0, %c0_0] : memref<128x128xbf16, #tpu.memory_space<vmem>>, vector<128x128xbf16>
    %c0_1 = arith.constant 0 : index
    %c0_2 = arith.constant 0 : index
    %1 = vector.load %arg2[%c0_1, %c0_2] : memref<128x128xbf16, #tpu.memory_space<vmem>>, vector<128x128xbf16>
    %cst = arith.constant dense<0.000000e+00> : vector<128x128xf32>
    %2 = tpu.matmul %0, %1, %cst {dimension_numbers = #tpu.dot_dimension_numbers<[1], [0], [0], [1], [0, 0, 1, 1], [], []>} : vector<128x128xbf16>, vector<128x128xbf16>, vector<128x128xf32> -> vector<128x128xf32>
    %c0_3 = arith.constant 0 : index
    %c0_4 = arith.constant 0 : index
    %3 = vector.load %arg3[%c0_3, %c0_4] : memref<1x128xf32, #tpu.memory_space<vmem>>, vector<1x128xf32>
    %4 = vector.broadcast %3 : vector<1x128xf32> to vector<128x128xf32>
    %5 = arith.addf %2, %4 : vector<128x128xf32>
    %cst_5 = arith.constant 0.000000e+00 : f32
    %6 = vector.broadcast %cst_5 : f32 to vector<128x128xf32>
    %7 = arith.maximumf %5, %6 : vector<128x128xf32>
    %8 = arith.truncf %7 : vector<128x128xf32> to vector<128x128xbf16>
    %c0_6 = arith.constant 0 : index
    %c0_7 = arith.constant 0 : index
    %9 = vector.load %arg4[%c0_6, %c0_7] : memref<128x128xbf16, #tpu.memory_space<vmem>>, vector<128x128xbf16>
    tpu.vector_store %arg4[%c0_6, %c0_7], %8 {strides = array<i32>} : memref<128x128xbf16, #tpu.memory_space<vmem>>, vector<128x128xbf16>,
    return
  }
  func.func @transform_0(%arg0: i32) -> (i32, i32) {
    %c0_i32 = arith.constant 0 : i32
    %c0_i32_0 = arith.constant 0 : i32
    return %arg0, %c0_i32 : i32, i32
  }
  func.func @transform_1(%arg0: i32) -> (i32, i32) {
    %c0_i32 = arith.constant 0 : i32
    %c0_i32_0 = arith.constant 0 : i32
    %c0_i32_1 = arith.constant 0 : i32
    return %c0_i32, %c0_i32_0 : i32, i32
  }
  func.func @transform_2(%arg0: i32) -> (i32, i32) {
    %c0_i32 = arith.constant 0 : i32
    %c0_i32_0 = arith.constant 0 : i32
    %c0_i32_1 = arith.constant 0 : i32
    return %c0_i32, %c0_i32_0 : i32, i32
  }
  func.func @transform_3(%arg0: i32) -> (i32, i32) {
    %c0_i32 = arith.constant 0 : i32
    %c0_i32_0 = arith.constant 0 : i32
    return %arg0, %c0_i32 : i32, i32
  }
}

</mosaic_0001>

<bundles_post_ra>
// kernel: tpu_custom_call.1
= control target key start
LH: loop header
LB: loop body
LE: loop exit
PB: predicated region body
PF: predicated region fallthrough
CT: control target
= control target key end

     0   :  { %8 = vsyncpa [#allocation3], 0  ;;  %s1279_s0 = inlined_call_operand.hbm [shape: bf16[256,128], index: 0, kind: input, shape index: {}]   ;;  %s1280_s1 = inlined_call_operand.hbm [shape: bf16[128,128], index: 1, kind: input, shape index: {}]   ;;  %s1281_s2 = inlined_call_operand.vmem [shape: f32[1,128], index: 2, kind: input, shape index: {}]   ;;  %s1282_s3 = inlined_call_operand.hbm [shape: bf16[256,128], index: 3, kind: output, shape index: {}]  }
   0x1   :  { %10 = vsyncpa [#allocation3 + $0x1], 0 }
   0x2   :  { %11 = vsyncpa [#allocation6], 0 }
   0x3   :  { %12 = vsyncpa [#allocation4], 0 }
   0x4   :  { %14 = vsyncpa [#allocation4 + $0x1], 0  ;;  %s1044_s12 = smov 0   ;;  %s1046_s13 = smov 0  }
   0x5   :  { %s1048_s14 = smov 0   ;;  %s1050_s15 = smov 0  }
   0x6 LB: > { %s1065_s16 = sadd.s32 4294967295, %s1015_s15   ;;  %s632_s17 = sadd.s32 4294967294, %s1015_s15   ;;  %s1015_s15 = sphi %s1050_s15, %s1302_s15   ;;  %s1011_s14 = sphi %s1048_s14, %s1301_s14   ;;  %s1007_s13 = sphi %s1046_s13, %s1300_s13   ;;  %s1003_s12 = sphi %s1044_s12, %s1299_s12  }
   0x7   : > { %p40_p0 = scmp.ne.s32.totalorder %s1007_s13, %s1003_s12  ;;  %p1283_p1 = scmp.eq.s32.totalorder %s1065_s16, 0 }
   0x8   : > { %p112_p3 = scmp.eq.s32.totalorder %s632_s17, 1  ;;  %p633_p5 = scmp.ge.s32.totalorder %s1015_s15, 1 }
   0x9   : > { %p1074_p4 = por %p1283_p1, %p40_p0  ;;  %p119_p7 = scmp.lt.s32.totalorder %s1015_s15, 3 }
   0xa   : > { %p1079_p6 = por %p112_p3, %p40_p0  ;;  %s1017_s21 = smov [#allocation5]  }
   0xb   : > { %s1286_s18 = scalar_select %p1074_p4, 1, 0 }
   0xc   : > { %s1287_s19 = scalar_select %p1079_p6, 1, 0 }
   0xd   : > { %p1084_p8 = pnand %p633_p5, %p119_p7  ;;  %s131_s22 = sshll.u32 %s1017_s21, 4  ;;  %s1088_s22 = int_to_ptr.vmem [resolvable:$true] %s131_s22 }
   0xe   : > { %s1100_s24 = sadd.s32 1, %s1015_s15   ;;  %s27_s25 = sadd.s32 1, %s1011_s14 }
   0xf   : > { %s1288_s20 = scalar_select %p1084_p8, 1, 0 }
  0x10   : > { %p818_p9 = pneg %p1084_p8  ;;  %s24_s26 = ssub.s32 %s1015_s15, %s1100_s24 }
  0x11   : > { %s887_s29 = scalar_lea.hbm %s1280_s1, 1024 }
  0x12   : > { %p1095_p11 = pnand %p818_p9, %p1283_p1  ;;  %p888_p12 = scmp.ne.s32.totalorder %s1280_s1, %s887_s29 }
  0x13   : > { %p894_p5 = scmp.lt.u32.totalorder %s887_s29, %s1280_s1 }
  0x14   : > { %p889_p13 = pneg %p1095_p11 }
  0x16   : > { %p890_p0 = pnand %p889_p13, %p888_p12 }
  0x18   : > { %p891_p3 = pneg %p890_p0 }
  0x1a   : > { %p896_p7 = pnand %p894_p5, %p891_p3 }
  0x1c   : > { %899 = shalt.err (!%p896_p7)
}
  0x1d   : > { %s900_s7 = scalar_lea.vmem %s1088_s22, 1024  ;;  %p908_p2 = scmp.lt.s32.totalorder %s1088_s22, %s1088_s22 }
  0x1e   : > { %p901_p9 = scmp.ne.s32.totalorder %s1088_s22, %s900_s7  ;;  %p909_p6 = scmp.lt.s32.totalorder %s900_s7, %s900_s7 }
  0x20   : > { %p903_p10 = pnand %p901_p9, %p889_p13  ;;  %p910_p4 = por %p909_p6, %p908_p2 }
  0x22   : > { %p904_p1 = pneg %p903_p10 }
  0x24   : > { %p911_p8 = pnand %p910_p4, %p904_p1 }
  0x26   : > { %914 = shalt.err (!%p911_p8)
}
  0x27   : > { %s1018_s8 = smov 64   ;;  %s1019_s9 = smov 4  }
  0x28   : > { %821 = dma.hbm_to_vmem [thread:$0]  (!%p1095_p11), %s1280_s1, 1024, %s1088_s22, [#allocation6], %s1018_s8, %s1018_s8, %s1019_s9  }
  0x29   : > { %p25_p1 = scmp.eq.s32.totalorder %s24_s26, 0  ;;  %p34_p2 = scmp.ne.s32.totalorder %s1011_s14, %s1007_s13 }
  0x2a   : > { %p35_p4 = scmp.eq.s32.totalorder %s1015_s15, 0  ;;  %p831_p6 = scmp.lt.s32.totalorder %s1015_s15, 2 }
  0x2b   : > { %s1134_s17 = scalar_select %p25_p1, %s1011_s14, %s27_s25  }
  0x2c   : > { %p36_p8 = por %p35_p4, %p34_p2  ;;  %p1290_p10 = scmp.eq.s32.totalorder %s1065_s16, 1 }
  0x2d   : > { %s148_s23 = sand.u32 1, %s1011_s14   ;;  %s681_s27 = sshll.u32 %s1015_s15, 10 }
  0x2e   : > { %p1138_p12 = por %p1290_p10, %p34_p2  ;;  %s636_s28 = sshll.u32 %s148_s23, 6 }
  0x2f   : > { %s1147_s4 = scalar_lea.hbm %s1279_s0, %s681_s27  ;;  %s152_s22 = scalar_lea.vmem [#allocation2], %s636_s28 }
  0x30   : > { %s159_s25 = sshll.u32 %s152_s22, 4  ;;  %p1149_p11 = pnand %p831_p6, %p36_p8  ;;  %s1153_s25 = int_to_ptr.vmem [resolvable:$true] %s159_s25 }
  0x31   : > { %s1155_s5 = scalar_lea.sflag [#allocation3], %s148_s23  ;;  %s915_s6 = scalar_lea.hbm %s1147_s4, 1024 }
  0x32   : > { %p916_p13 = scmp.ne.s32.totalorder %s1147_s4, %s915_s6  ;;  %p917_p0 = pneg %p1149_p11 }
  0x33   : > { %s920_s11 = scalar_lea.hbm %s1279_s0, 2048  ;;  %p921_p7 = scmp.lt.u32.totalorder %s1147_s4, %s1279_s0 }
  0x34   : > { %p918_p3 = pnand %p917_p0, %p916_p13  ;;  %p922_p9 = scmp.lt.u32.totalorder %s920_s11, %s915_s6 }
  0x35   : > { %p924_p2 = scmp.lt.u32.totalorder %s915_s6, %s1147_s4 }
  0x36   : > { %p919_p5 = pneg %p918_p3  ;;  %p923_p1 = por %p922_p9, %p921_p7 }
  0x38   : > { %p925_p4 = por %p924_p2, %p923_p1 }
  0x3a   : > { %p926_p6 = pnand %p925_p4, %p919_p5 }
  0x3c   : > { %929 = shalt.err (!%p926_p6)
}
  0x3d   : > { %s930_s23 = scalar_lea.vmem %s1153_s25, 1024  ;;  %s1020_s29 = smov [#allocation2]  }
  0x3e   : > { %p931_p8 = scmp.ne.s32.totalorder %s1153_s25, %s930_s23  ;;  %s935_s30 = sshll.u32 %s1020_s29, 4  ;;  %s936_s30 = int_to_ptr.vmem [resolvable:$false] %s935_s30 }
  0x3f   : > { %s937_s22 = scalar_lea.vmem %s936_s30, 2048  ;;  %p938_p3 = scmp.lt.s32.totalorder %s1153_s25, %s936_s30 }
  0x40   : > { %p933_p10 = pnand %p931_p8, %p917_p0  ;;  %p939_p7 = scmp.lt.s32.totalorder %s937_s22, %s930_s23 }
  0x42   : > { %p934_p13 = pneg %p933_p10  ;;  %p940_p9 = por %p939_p7, %p938_p3 }
  0x44   : > { %p941_p1 = pnand %p940_p9, %p934_p13 }
  0x46   : > { %944 = shalt.err (!%p941_p1)
}
  0x47   : > { %825 = dma.hbm_to_vmem [thread:$0]  (!%p1149_p11), %s1147_s4, 1024, %s1153_s25, %s1155_s5, %s1018_s8, %s1018_s8, %s1019_s9  }
  0x48   : > { %p1293_p0 = scmp.ne.s32.totalorder %s1288_s20, 0 }
  0x49   : > { %s1189_s6 = sand.u32 (!%p1293_p0), 1, %s1007_s13   ;;  %p1294_p5 = scmp.ne.s32.totalorder (!%p1293_p0), %s1286_s18, 0 }
  0x4a   : > { %171 = sbr.rel (%p1293_p0) target bundleno = 362 (0x16a), region = 32  ;;  %s640_s7 = sshll.u32 (!%p1293_p0), %s1189_s6, 6 }
  0x4b   : > { %s174_s10 = scalar_lea.sflag (!%p1293_p0), [#allocation3], %s1189_s6  ;;  %s1195_s26 = scalar_lea.vmem (!%p1293_p0), [#allocation2], %s640_s7 }
  0x51   : > { %990 = dma.done.wait (%p1294_p5), %s174_s10, 1024  }
  0x52   : > { %992 = vsyncadd (%p1294_p5), %s174_s10, 4294966272  ;;  %p1295_p11 = scmp.eq.s32.totalorder %s1065_s16, 0 }
  0x54   : > { %994 = dma.done.wait (%p1295_p11), [#allocation6], 1024   ;;  %p1296_p2 = pmov %p1295_p11 }
  0x55   : > { %v871_v0 = vld [vmem:[#allocation5] sm:$0xff]   ;;  %v872_v1 = vld [vmem:[#allocation5 + $0x8] sm:$0xff]   ;;  %v873_v2 = vld [vmem:[#allocation5 + $0x10] sm:$0xff]   ;;  %s1218_s8 = scalar_lea.vmem [#allocation7], %s640_s7  ;;  %s698_s4 = sshll.u32 %s1065_s16, 10 }
  0x56   : > { %996 = vsyncadd (%p1296_p2), [#allocation6], 4294966272  ;;  %762 = vmatprep.subr.bf16.mxu0 %v871_v0  ;;  %794 = vmatprep.subr.bf16.mxu1 %v871_v0  ;;  %v874_v3 = vld [vmem:[#allocation5 + $0x18] sm:$0xff]   ;;  %v879_v4 = vld [vmem:[%s1195_s26] sm:$0xff]   ;;  %s549_s9 = sshll.u32 %s1218_s8, 4  ;;  %s1231_s5 = scalar_lea.hbm %s1282_s3, %s698_s4  ;;  %s1226_s9 = int_to_ptr.vmem [resolvable:$true] %s549_s9 }
  0x57   : > { %763 = vmatpush3.bf16.msra.mxu0 %v871_v0  ;;  %802 = vmatpush3.bf16.msra.mxu1 %v871_v0  ;;  %v880_v5 = vld [vmem:[%s1195_s26 + $0x20] sm:$0xff]   ;;  %v876_v7 = vld [vmem:[#allocation5 + $0x28] sm:$0xff]   ;;  %v877_v8 = vld [vmem:[#allocation5 + $0x30] sm:$0xff]   ;;  %s536_s11 = scalar_lea.sflag [#allocation4], %s1189_s6  ;;  %s945_s27 = scalar_lea.vmem %s1226_s9, 1024 }
  0x58   : > { %764 = vmatprep.subr.bf16.mxu0 %v872_v1  ;;  %795 = vmatprep.subr.bf16.mxu1 %v872_v1  ;;  %v875_v6 = vld [vmem:[#allocation5 + $0x20] sm:$0xff]   ;;  %v878_v9 = vld [vmem:[#allocation5 + $0x38] sm:$0xff]   ;;  %v881_v10 = vld [vmem:[%s1195_s26 + $0x8] sm:$0xff]   ;;  %p946_p4 = scmp.ne.s32.totalorder %s1226_s9, %s945_s27  ;;  %s1021_s28 = smov [#allocation7]  }
  0x59   : > { %778 = vmatprep.mubr.bf16.mxu0 %v879_v4  ;;  %786 = vmatprep.mubr.bf16.mxu1 %v880_v5  ;;  %v882_v11 = vld [vmem:[%s1195_s26 + $0x28] sm:$0xff]   ;;  %v883_v12 = vld [vmem:[%s1195_s26 + $0x10] sm:$0xff]   ;;  %v885_v14 = vld [vmem:[%s1195_s26 + $0x18] sm:$0xff]   ;;  %s949_s23 = sshll.u32 %s1021_s28, 4  ;;  %s950_s23 = int_to_ptr.vmem [resolvable:$false] %s949_s23 }
  0x5a   : > { %v884_v13 = vld [vmem:[%s1195_s26 + $0x30] sm:$0xff]   ;;  %v886_v15 = vld [vmem:[%s1195_s26 + $0x38] sm:$0xff]   ;;  %v643_v16 = vld [vmem:[%s1281_s2] ss:$0 sm:$0xff]  ;;  %p947_p6 = pnand %p946_p4, %p1138_p12  ;;  %s951_s29 = scalar_lea.vmem %s950_s23, 2048 }
  0x5b   : > { %765 = vmatpush3.bf16.msra.mxu0 %v872_v1  ;;  %803 = vmatpush3.bf16.msra.mxu1 %v872_v1  ;;  %p952_p10 = scmp.lt.s32.totalorder %s1226_s9, %s950_s23  ;;  %p953_p13 = scmp.lt.s32.totalorder %s951_s29, %s945_s27 }
  0x5c   : > { %766 = vmatprep.subr.bf16.mxu0 %v873_v2  ;;  %796 = vmatprep.subr.bf16.mxu1 %v873_v2  ;;  %p948_p8 = pneg %p947_p6 }
  0x5d   : > { %p954_p3 = por %p953_p13, %p952_p10 }
  0x5f   : > { %767 = vmatpush3.bf16.msra.mxu0 %v873_v2  ;;  %804 = vmatpush3.bf16.msra.mxu1 %v873_v2  ;;  %p955_p7 = pnand %p954_p3, %p948_p8 }
  0x60   : > { %768 = vmatprep.subr.bf16.mxu0 %v874_v3  ;;  %797 = vmatprep.subr.bf16.mxu1 %v874_v3 }
  0x63   : > { %769 = vmatpush3.bf16.msra.mxu0 %v874_v3  ;;  %805 = vmatpush3.bf16.msra.mxu1 %v874_v3 }
  0x64   : > { %770 = vmatprep.subr.bf16.mxu0 %v875_v6  ;;  %798 = vmatprep.subr.bf16.mxu1 %v875_v6 }
  0x67   : > { %771 = vmatpush3.bf16.msra.mxu0 %v875_v6  ;;  %806 = vmatpush3.bf16.msra.mxu1 %v875_v6 }
  0x68   : > { %772 = vmatprep.subr.bf16.mxu0 %v876_v7  ;;  %799 = vmatprep.subr.bf16.mxu1 %v876_v7 }
  0x6b   : > { %773 = vmatpush3.bf16.msra.mxu0 %v876_v7  ;;  %807 = vmatpush3.bf16.msra.mxu1 %v876_v7 }
  0x6c   : > { %774 = vmatprep.subr.bf16.mxu0 %v877_v8  ;;  %800 = vmatprep.subr.bf16.mxu1 %v877_v8 }
  0x6f   : > { %775 = vmatpush3.bf16.msra.mxu0 %v877_v8  ;;  %808 = vmatpush3.bf16.msra.mxu1 %v877_v8 }
  0x70   : > { %776 = vmatprep.subr.bf16.mxu0 %v878_v9  ;;  %801 = vmatprep.subr.bf16.mxu1 %v878_v9 }
  0x73   : > { %777 = vmatpush3.bf16.msra.mxu0 %v878_v9  ;;  %809 = vmatpush3.bf16.msra.mxu1 %v878_v9 }
  0x76   : > { %779 = vmatmul.mubr.bf16.vlgmr.msra.gmra.mrb[0].mxu0 %v881_v10  ;;  %787 = vmatmul.mubr.bf16.vlgmr.msra.gmra.mrb[0].mxu1 %v882_v11 }
  0x77   : > { %782 = vmatprep.mubr.bf16.mxu0 %v883_v12  ;;  %790 = vmatprep.mubr.bf16.mxu1 %v884_v13 }
  0x7e   : > { %783 = vmatmul.mubr.bf16.gmra.mrb[4].mxu0 %v885_v14  ;;  %791 = vmatmul.mubr.bf16.gmra.mrb[4].mxu1 %v886_v15 }
 0x149   : > { %v780_v17 = vpop.f32.mrb[0].mxu0  ;;  %v788_v18 = vpop.f32.mrb[0].mxu1 }
 0x14a   : > { %v385_v19 = vadd.f32 %v780_v17, %v643_v16  ;;  %v417_v20 = vadd.f32 %v788_v18, %v643_v16  ;;  %v376_v21 = vpop.f32.mrb[1].mxu0  ;;  %v408_v22 = vpop.f32.mrb[1].mxu1 }
 0x14b   : > { %v377_v23 = vadd.f32 %v643_v16, %v376_v21  ;;  %v409_v24 = vadd.f32 %v643_v16, %v408_v22  ;;  %v781_v25 = vpop.f32.mrb[2].mxu0  ;;  %v789_v26 = vpop.f32.mrb[2].mxu1 }
 0x14c   : > { %v388_v27 = vadd.f32 %v781_v25, %v643_v16  ;;  %v420_v28 = vadd.f32 %v789_v26, %v643_v16  ;;  %v379_v29 = vpop.f32.mrb[3].mxu0  ;;  %v411_v30 = vpop.f32.mrb[3].mxu1  ;;  %v441_v33 = vmax.f32 %v385_v19, 0.0  ;;  %v449_v34 = vmax.f32 %v417_v20, 0.0 }
 0x14d   : > { %v380_v31 = vadd.f32 %v643_v16, %v379_v29  ;;  %v412_v32 = vadd.f32 %v643_v16, %v411_v30  ;;  %v439_v37 = vmax.f32 %v377_v23, 0.0  ;;  %v447_v38 = vmax.f32 %v409_v24, 0.0 }
 0x14e   : > { %v442_v35 = vmax.f32 %v388_v27, 0.0  ;;  %v450_v36 = vmax.f32 %v420_v28, 0.0 }
 0x14f   : > { %v440_v39 = vmax.f32 %v380_v31, 0.0  ;;  %v448_v40 = vmax.f32 %v412_v32, 0.0 }
 0x150   : > { %v707_v41 = vpack.c.bf16 %v442_v35, %v441_v33  ;;  %v727_v42 = vpack.c.bf16 %v450_v36, %v449_v34 }
 0x151   : > { %v702_v43 = vpack.c.bf16 %v440_v39, %v439_v37  ;;  %v722_v44 = vpack.c.bf16 %v448_v40, %v447_v38  ;;  %v784_v45 = vpop.f32.mrb[4].mxu0  ;;  %v792_v46 = vpop.f32.mrb[4].mxu1 }
 0x152   : > { %739 = vst [vmem:[%s1218_s8 + $0x8] sm:$0xff] %v707_v41   ;;  %743 = vst [vmem:[%s1218_s8 + $0x28] sm:$0xff] %v727_v42   ;;  %v401_v47 = vadd.f32 %v784_v45, %v643_v16  ;;  %v433_v48 = vadd.f32 %v792_v46, %v643_v16  ;;  %v392_v49 = vpop.f32.mrb[5].mxu0  ;;  %v424_v50 = vpop.f32.mrb[5].mxu1 }
 0x153   : > { %703 = vst [vmem:[%s1218_s8] sm:$0xff] %v702_v43   ;;  %742 = vst [vmem:[%s1218_s8 + $0x20] sm:$0xff] %v722_v44   ;;  %v393_v51 = vadd.f32 %v643_v16, %v392_v49  ;;  %v425_v52 = vadd.f32 %v643_v16, %v424_v50  ;;  %v785_v53 = vpop.f32.mrb[6].mxu0  ;;  %v793_v54 = vpop.f32.mrb[6].mxu1 }
 0x154   : > { %v404_v55 = vadd.f32 %v785_v53, %v643_v16  ;;  %v436_v56 = vadd.f32 %v793_v54, %v643_v16  ;;  %v395_v57 = vpop.f32.mrb[7].mxu0  ;;  %v427_v58 = vpop.f32.mrb[7].mxu1  ;;  %v445_v61 = vmax.f32 %v401_v47, 0.0  ;;  %v453_v62 = vmax.f32 %v433_v48, 0.0 }
 0x155   : > { %v396_v59 = vadd.f32 %v643_v16, %v395_v57  ;;  %v428_v60 = vadd.f32 %v643_v16, %v427_v58  ;;  %v443_v1 = vmax.f32 %v393_v51, 0.0  ;;  %v451_v2 = vmax.f32 %v425_v52, 0.0 }
 0x156   : > { %v446_v63 = vmax.f32 %v404_v55, 0.0  ;;  %v454_v0 = vmax.f32 %v436_v56, 0.0 }
 0x157   : > { %v444_v3 = vmax.f32 %v396_v59, 0.0  ;;  %v452_v4 = vmax.f32 %v428_v60, 0.0 }
 0x158   : > { %v717_v5 = vpack.c.bf16 %v446_v63, %v445_v61  ;;  %v737_v6 = vpack.c.bf16 %v454_v0, %v453_v62 }
 0x159   : > { %v712_v7 = vpack.c.bf16 %v444_v3, %v443_v1  ;;  %v732_v8 = vpack.c.bf16 %v452_v4, %v451_v2 }
 0x15a   : > { %741 = vst [vmem:[%s1218_s8 + $0x18] sm:$0xff] %v717_v5   ;;  %745 = vst [vmem:[%s1218_s8 + $0x38] sm:$0xff] %v737_v6  }
 0x15b   : > { %740 = vst [vmem:[%s1218_s8 + $0x10] sm:$0xff] %v712_v7   ;;  %744 = vst [vmem:[%s1218_s8 + $0x30] sm:$0xff] %v732_v8  }
 0x15c   : > { %958 = shalt.err (!%p955_p7)
}
 0x15d   : > { %s959_s30 = scalar_lea.hbm %s1231_s5, 1024  ;;  %s963_s10 = scalar_lea.hbm %s1282_s3, 2048 }
 0x15e   : > { %p960_p9 = scmp.ne.s32.totalorder %s1231_s5, %s959_s30  ;;  %p964_p5 = scmp.lt.u32.totalorder %s1231_s5, %s1282_s3 }
 0x15f   : > { %p965_p11 = scmp.lt.u32.totalorder %s963_s10, %s959_s30  ;;  %p967_p4 = scmp.lt.u32.totalorder %s959_s30, %s1231_s5 }
 0x160   : > { %p961_p1 = pnand %p960_p9, %p1138_p12 }
 0x161   : > { %p966_p2 = por %p965_p11, %p964_p5 }
 0x162   : > { %p962_p0 = pneg %p961_p1 }
 0x163   : > { %p968_p6 = por %p967_p4, %p966_p2 }
 0x165   : > { %p969_p8 = pnand %p968_p6, %p962_p0 }
 0x167   : > { %972 = shalt.err (!%p969_p8)
}
 0x168   : > { %s1022_s20 = smov 64   ;;  %s1023_s8 = smov 4  }
 0x169   : > { %816 = dma.vmem_to_hbm [thread:$0]  (%p1138_p12), %s1226_s9, 1024, %s1231_s5, %s536_s11, %s1022_s20, %s1022_s20, %s1023_s8  }
 0x16a PF: > { %s564_s4 = sand.u32 1, %s1003_s12   ;;  %p1297_p10 = scmp.ne.s32.totalorder %s1287_s19, 0 }
 0x16b   : > { %p1298_p13 = scmp.ge.s32.totalorder %s1015_s15, 2  ;;  %s565_s16 = scalar_lea.sflag [#allocation4], %s564_s4 }
 0x16d   : > { %p827_p3 = pnand %p1298_p13, %p1297_p10 }
 0x16f   : > { %998 = dma.done.wait (!%p827_p3), %s565_s16, 1024  }
 0x170   : > { %1000 = vsyncadd (!%p827_p3), %s565_s16, 4294966272  ;;  %p17_p7 = scmp.ge.s32.totalorder %s1100_s24, 4   ;;  %s1299_s12 = smov %s1007_s13 }
 0x171   : > { %s1300_s13 = smov %s1011_s14  ;;  %s1301_s14 = smov %s1134_s17 }
 0x172   : > { %s1302_s15 = smov %s1100_s24  ;;  %19 = sbr.rel (!%p17_p7) target bundleno = 6 (0x6), region = 81 }
 0x179   :  { %570 = vsyncpa [#allocation3], 1 }
 0x17a   :  { %572 = vsyncpa [#allocation3 + $0x1], 1 }
 0x17b   :  { %573 = vsyncpa [#allocation6], 1 }
 0x17c   :  { %574 = vsyncpa [#allocation4], 1 }
 0x17d   :  { %576 = vsyncpa [#allocation4 + $0x1], 1 }

</bundles_post_ra>
